<compile_context>
chip_gen: v7x
topology: tpu7x:2x2x1
jax: 0.10.0
libtpu: 0.0.40
codegen_flags: <defaults>
</compile_context>

<pallas_src>
import jax
import jax.numpy as jnp
from jax.experimental import pallas as pl
from jax.experimental.pallas import tpu as pltpu

LANES = 512                            # wide lane-dense last dim -> unmasked vst / long DMA bursts
TARGET_TILE_BYTES = 4 * 1024 * 1024    # ~4 MiB input tile per grid step
VMEM_LIMIT_BYTES = 32 * 1024 * 1024    # >= v5e need, == v6e/v7x scoped default, < v7x physical


def _round_up(x, m):
    return ((x + m - 1) // m) * m


def _affine_kernel(ab_ref, x_ref, o_ref):
    # ab_ref: (1, 2) f32 in SMEM holding [a, b]; shared across all grid steps.
    # x_ref / o_ref: (tile_r, tile_c) tiles in VMEM (double-buffered by Pallas).
    a = ab_ref[0, 0]
    b = ab_ref[0, 1]
    o_ref[...] = (a * x_ref[...].astype(jnp.float32) + b).astype(o_ref.dtype)


def _pick_2d_view(xs):
    """Zero-copy 2-D view (R, C) of xs, preferring a wide lane-dense C."""
    n = xs.size
    for lanes in (LANES, 256, 128):
        if n % lanes == 0:
            return n // lanes, lanes
    # Ragged total size: collapse to (prod(leading dims), last dim); still a free reshape.
    if xs.ndim >= 2:
        return n // xs.shape[-1], xs.shape[-1]
    return 1, n


def net_forward(xs, a, b):
    """Compute a * xs + b with a tiled, pipelined, pad-free Pallas TPU kernel."""
    orig_shape = xs.shape
    out_dtype = jnp.result_type(xs.dtype, a.dtype, b.dtype)
    n = xs.size
    if n == 0:
        return jnp.zeros(orig_shape, out_dtype)

    R, C = _pick_2d_view(xs)
    x2d = xs.reshape(R, C)  # zero-copy reshape of a contiguous array — no HBM pass

    itemsize = jnp.dtype(xs.dtype).itemsize
    # Sublane packing of the native tile: 8 (4-byte), 16 (2-byte), 32 (1-byte).
    packing = 8 * max(1, 4 // itemsize)

    # Column tiling: 512-wide lane-dense blocks, or the full (possibly ragged) row.
    # Either choice is legal: tile_c is a multiple of 128 or equals the full dim.
    tile_c = LANES if C >= LANES else C

    # Row tiling: ~TARGET_TILE_BYTES per block, but split >=2 ways when possible so
    # both v7x TensorCores get work. Pallas masks the partial last block (no pad).
    rows_aligned = _round_up(R, packing)
    target_rows = _round_up(max(TARGET_TILE_BYTES // (tile_c * itemsize), packing), packing)
    two_way = _round_up((rows_aligned + 1) // 2, packing)
    tile_r = min(target_rows, two_way)

    grid = (pl.cdiv(R, tile_r), pl.cdiv(C, tile_c))

    # Fold both scalar parameters into one tiny SMEM operand.
    ab = jnp.concatenate([a.reshape(-1), b.reshape(-1)]).reshape(1, 2).astype(jnp.float32)

    out2d = pl.pallas_call(
        _affine_kernel,
        out_shape=jax.ShapeDtypeStruct((R, C), out_dtype),
        grid=grid,
        in_specs=[
            pl.BlockSpec(memory_space=pltpu.MemorySpace.SMEM),      # [a, b] scalars (whole)
            pl.BlockSpec((tile_r, tile_c), lambda i, j: (i, j)),    # xs tiles
        ],
        out_specs=pl.BlockSpec((tile_r, tile_c), lambda i, j: (i, j)),
        compiler_params=pltpu.CompilerParams(
            dimension_semantics=("parallel", "parallel"),
            vmem_limit_bytes=VMEM_LIMIT_BYTES,
        ),
        cost_estimate=pl.CostEstimate(
            flops=2 * n,
            bytes_accessed=n * (itemsize + jnp.dtype(out_dtype).itemsize),
            transcendentals=0,
        ),
    )(ab, x2d)

    return out2d.reshape(orig_shape)


if __name__ == "__main__":
    key = jax.random.PRNGKey(0)
    k_a, k_b, k_x, k_y = jax.random.split(key, 4)

    # Deterministic parameter init mirroring: nn.Parameter(torch.rand(1) * 0.001)
    a = jax.random.uniform(k_a, (1,), dtype=jnp.float32) * 0.001
    b = jax.random.uniform(k_b, (1,), dtype=jnp.float32) * 0.001

    forward = jax.jit(net_forward)

    # Small NCHW-style input (lane-aligned zero-copy fast path): batch=2, channels=4, 16x16.
    xs = jax.random.normal(k_x, (2, 4, 16, 16), dtype=jnp.float32)
    out = jax.block_until_ready(forward(xs, a, b))
    ref = a[0] * xs + b[0]
    assert out.shape == xs.shape and out.dtype == xs.dtype
    assert jnp.allclose(out, ref, atol=1e-6, rtol=1e-6)

    # Ragged shape: exercises the pad-free fallback 2-D view + masked last block.
    ys = jax.random.normal(k_y, (3, 5, 7), dtype=jnp.float32)
    out2 = jax.block_until_ready(forward(ys, a, b))
    ref2 = a[0] * ys + b[0]
    assert out2.shape == ys.shape
    assert jnp.allclose(out2, ref2, atol=1e-6, rtol=1e-6)

    print("KERNEL_OK")
</pallas_src>

<mosaic_0001>
module attributes {stable_mosaic.version = 11 : i64} {
  func.func @_affine_kernel(%arg0: i32, %arg1: i32, %arg2: memref<1x2xf32, #tpu.memory_space<smem>>, %arg3: memref<8x512xf32, #tpu.memory_space<vmem>>, %arg4: memref<8x512xf32, #tpu.memory_space<vmem>>) attributes {dimension_semantics = [#tpu.dimension_semantics<parallel>, #tpu.dimension_semantics<parallel>], iteration_bounds = array<i64: 1, 1>, scalar_prefetch = 0 : i64, scratch_operands = 0 : i64, tpu.core_type = #tpu.core_type<tc>, window_params = [{transform_indices = @transform_0, window_bounds = array<i64: 1, 2>}, {transform_indices = @transform_1, window_bounds = array<i64: 8, 512>}, {transform_indices = @transform_2, window_bounds = array<i64: 8, 512>}]} {
    %c0 = arith.constant 0 : index
    %c0_0 = arith.constant 0 : index
    %0 = memref.load %arg2[%c0, %c0_0] : memref<1x2xf32, #tpu.memory_space<smem>>
    %c0_1 = arith.constant 0 : index
    %c1 = arith.constant 1 : index
    %1 = memref.load %arg2[%c0_1, %c1] : memref<1x2xf32, #tpu.memory_space<smem>>
    %c0_2 = arith.constant 0 : index
    %c0_3 = arith.constant 0 : index
    %2 = vector.load %arg3[%c0_2, %c0_3] : memref<8x512xf32, #tpu.memory_space<vmem>>, vector<8x512xf32>
    %3 = vector.broadcast %0 : f32 to vector<8x512xf32>
    %4 = arith.mulf %3, %2 : vector<8x512xf32>
    %5 = vector.broadcast %1 : f32 to vector<8x512xf32>
    %6 = arith.addf %4, %5 : vector<8x512xf32>
    %c0_4 = arith.constant 0 : index
    %c0_5 = arith.constant 0 : index
    %7 = vector.load %arg4[%c0_4, %c0_5] : memref<8x512xf32, #tpu.memory_space<vmem>>, vector<8x512xf32>
    tpu.vector_store %arg4[%c0_4, %c0_5], %6 {strides = array<i32>} : memref<8x512xf32, #tpu.memory_space<vmem>>, vector<8x512xf32>,
    return
  }
  func.func @transform_0(%arg0: i32, %arg1: i32) -> (i32, i32) {
    %c0_i32 = arith.constant 0 : i32
    %c0_i32_0 = arith.constant 0 : i32
    %c0_i32_1 = arith.constant 0 : i32
    return %c0_i32, %c0_i32_0 : i32, i32
  }
  func.func @transform_1(%arg0: i32, %arg1: i32) -> (i32, i32) {
    %c0_i32 = arith.constant 0 : i32
    return %arg0, %arg1 : i32, i32
  }
  func.func @transform_2(%arg0: i32, %arg1: i32) -> (i32, i32) {
    %c0_i32 = arith.constant 0 : i32
    return %arg0, %arg1 : i32, i32
  }
}

</mosaic_0001>

<bundles_post_ra>
// kernel: net_forward.1
= control target key start
LH: loop header
LB: loop body
LE: loop exit
PB: predicated region body
PF: predicated region fallthrough
CT: control target
= control target key end

     0   :  { %7 = vsyncpa [#allocation3], 0  ;;  %s119_s0 = inlined_call_operand.vmem [shape: f32[1,2], index: 0, kind: input, shape index: {}]   ;;  %s120_s1 = inlined_call_operand.vmem [shape: f32[4,512], index: 1, kind: input, shape index: {}]   ;;  %s121_s2 = inlined_call_operand.vmem [shape: f32[4,512], index: 2, kind: output, shape index: {}]  }
   0x1   :  { %s14_s11 = sshll.u32 %s119_s0, 4  ;;  %s15_s11 = int_to_ptr.vmem [resolvable:$true] %s14_s11 }
   0x2   :  { %s74_s12 = scalar_lea.vmem %s15_s11, 16  ;;  %p79_p1 = scmp.lt.s32.totalorder %s15_s11, %s15_s11 }
   0x3   :  { %p75_p0 = scmp.ne.s32.totalorder %s15_s11, %s74_s12  ;;  %p80_p2 = scmp.lt.s32.totalorder %s74_s12, %s74_s12 }
   0x5   :  { %p81_p3 = por %p80_p2, %p79_p1 }
   0x7   :  { %p82_p4 = pnand %p81_p3, %p75_p0 }
   0x9   :  { %85 = shalt.err (!%p82_p4)
}
   0xa   :  { %s88_s13 = smov [#allocation2]  }
   0xb   :  { %17 = dma.vmem_to_smem %s15_s11, 16, %s88_s13, [#allocation3]  }
   0xc   :  { %86 = dma.done.wait [#allocation3], 16  }
   0xd   :  { %87 = vsyncadd [#allocation3], 4294967280 }
   0xe   :  { %23 = sfence }
   0xf   :  { %s24_s14 = sld [smem:[#allocation2]]  ;;  %s72_s15 = sld [smem:[#allocation2 + $0x1]]  ;;  %v26_v0 = vld [vmem:[%s120_s1] sm:$0xff]  ;;  %v27_v1 = vld [vmem:[%s120_s1 + $0x8] sm:$0xff] }
  0x15   :  { %v30_v2 = vstv %s24_s14  ;;  %v35_v3 = vstv %s72_s15 }
  0x16   :  { %v31_v4 = vmul.f32 %v30_v2, %v26_v0  ;;  %v32_v5 = vmul.f32 %v30_v2, %v27_v1 }
  0x18   :  { %v36_v6 = vadd.f32 %v35_v3, %v31_v4  ;;  %v37_v7 = vadd.f32 %v35_v3, %v32_v5 }
  0x1a   :  { %59 = vst [vmem:[%s121_s2] sm:$0xff] %v36_v6  ;;  %61 = vst [vmem:[%s121_s2 + $0x8] sm:$0xff] %v37_v7 }
  0x1b   :  { %67 = vsyncpa [#allocation3], 1 }

</bundles_post_ra>
